<compile_context>
chip_gen: v5e
topology: v5e:2x2
jax: 0.10.0
libtpu: 0.0.40
codegen_flags: <defaults>
</compile_context>

<pallas_src>
import functools

import jax
import jax.numpy as jnp
from jax.experimental import pallas as pl
from jax.experimental.pallas import tpu as pltpu


def _cdiv(a, b):
    return -(-a // b)


def _round_up(a, m):
    return _cdiv(a, m) * m


# ----------------------------------------------------------------------------
# Kernel body
# ----------------------------------------------------------------------------
def _make_ff_kernel(n_layers: int):
    """Kernel body for an MLP with `n_layers` hidden (Linear+Tanh) layers.

    Ref layout (per batch tile):
      obs_ref (TB, ob_dim), acs_ref (TB, ac_dim),
      w0_obs (ob_dim, size), w0_acs (ac_dim, size), b0 (1, size),
      [w_i, b_i] for the remaining n_layers linears (hidden 2..n + output),
      dmean (1, ob_dim), dstd (1, ob_dim),
      outputs: next_obs_ref (TB, ob_dim), dnorm_ref (TB, ob_dim)
    """

    def kernel(*refs):
        obs_ref, acs_ref = refs[0], refs[1]
        w0_obs_ref, w0_acs_ref, b0_ref = refs[2], refs[3], refs[4]
        rest = refs[5:5 + 2 * n_layers]
        dmean_ref, dstd_ref = refs[5 + 2 * n_layers], refs[6 + 2 * n_layers]
        next_obs_ref, dnorm_ref = refs[7 + 2 * n_layers], refs[8 + 2 * n_layers]

        obs = obs_ref[...]
        # First linear, with the concat folded into two matmuls that accumulate
        # into the same f32 result:  concat([obs, acs]) @ W1 + b1.
        h = (
            jnp.dot(obs, w0_obs_ref[...], preferred_element_type=jnp.float32)
            + jnp.dot(acs_ref[...], w0_acs_ref[...],
                      preferred_element_type=jnp.float32)
            + b0_ref[...]
        )
        if n_layers >= 1:
            h = jnp.tanh(h)  # f32 tanh -> EUP slot
            # Hidden layers 2..n_layers: Linear + Tanh.
            for layer in range(n_layers - 1):
                w = rest[2 * layer][...]
                b = rest[2 * layer + 1][...]
                h = jnp.tanh(
                    jnp.dot(h, w, preferred_element_type=jnp.float32) + b
                )
            # Output layer: Linear + Identity.
            w_out = rest[2 * (n_layers - 1)][...]
            b_out = rest[2 * (n_layers - 1) + 1][...]
            h = jnp.dot(h, w_out, preferred_element_type=jnp.float32) + b_out

        delta_norm = h
        dnorm_ref[...] = delta_norm
        # unnormalize + residual add, fused (f32 throughout).
        next_obs_ref[...] = obs + delta_norm * dstd_ref[...] + dmean_ref[...]

    return kernel


# ----------------------------------------------------------------------------
# Tiling / VMEM budgeting
# ----------------------------------------------------------------------------
def _vmem_capacity_bytes() -> int:
    """Physical per-core VMEM capacity; conservative (v7x) fallback."""
    try:
        info = pltpu.get_tpu_info()
        for attr in ("vmem_capacity_bytes", "vmem_size_bytes"):
            cap = getattr(info, attr, None)
            if cap:
                return int(cap)
    except Exception:
        pass
    return 64 * 1024 * 1024  # v7x per-TensorCore VMEM (smallest of the gens)


def _choose_tiling(batch: int, max_tile_b: int):
    """Pick (tile_b, vmem_limit_bytes) from device VMEM and batch size."""
    vmem_cap = _vmem_capacity_bytes()
    # Tile-sizing budget: ~75% of physical VMEM, capped at 96 MiB (v5e/v6e).
    budget = min((vmem_cap * 3) // 4, 96 * 1024 * 1024)
    # Per-row VMEM cost (lane-padded to 128, f32): obs/acs/2 outputs ~= 2 KiB/row,
    # ~4 KiB/row double-buffered, plus ~2 KiB/row of live hidden activations.
    bytes_per_row = 6 * 1024
    cap = min(max_tile_b, budget // bytes_per_row)
    cap = max(8, (cap // 8) * 8)

    min_rows_per_step = 2048   # keep per-step DMA well above ~0.35us step cost
    target_steps = 4           # engage pipelining + v7x megacore split

    if batch <= min_rows_per_step:
        # Latency-bound regime: one block (full-array block is always legal).
        tile_b = min(cap, batch)
    else:
        tile_b = min(cap, max(min_rows_per_step,
                              _round_up(_cdiv(batch, target_steps), 8)))

    # Scoped-VMEM limit: tile budget + compile headroom, below physical VMEM.
    vmem_limit = min(vmem_cap - 8 * 1024 * 1024, budget + 16 * 1024 * 1024)
    vmem_limit = max(vmem_limit, 32 * 1024 * 1024)
    return tile_b, vmem_limit


# ----------------------------------------------------------------------------
# Public wrapper
# ----------------------------------------------------------------------------
@functools.partial(jax.jit, static_argnames=("n_layers", "max_tile_b"))
def ff_model_forward(obs, acs, params, delta_mean, delta_std, *,
                     n_layers, max_tile_b=16384):
    """Pallas-backed forward pass of FFModel.

    obs:  (B, ob_dim) float32
    acs:  (B, ac_dim) float32
    params: list of (W, b) with W: (in, out), b: (out,)
    delta_mean/delta_std: (ob_dim,)
    returns (next_obs_pred, delta_pred_normalized)
    """
    B, ob_dim = obs.shape
    _, ac_dim = acs.shape

    obs = obs.astype(jnp.float32)
    acs = acs.astype(jnp.float32)

    # Split the first linear along its input dim (static slices on tiny weights).
    w0, b0 = params[0]
    w0 = w0.astype(jnp.float32)
    w0_obs = w0[:ob_dim]
    w0_acs = w0[ob_dim:]
    b0 = b0.reshape(1, -1).astype(jnp.float32)

    rest_flat = []
    for (w, b) in params[1:]:
        rest_flat.append(w.astype(jnp.float32))
        rest_flat.append(b.reshape(1, -1).astype(jnp.float32))

    dmean = delta_mean.reshape(1, ob_dim).astype(jnp.float32)
    dstd = delta_std.reshape(1, ob_dim).astype(jnp.float32)

    # --- Batch tiling (no wrapper-side pad: Pallas masks the ragged block) ---
    tile_b, vmem_limit = _choose_tiling(B, max_tile_b)
    grid = (_cdiv(B, tile_b),)

    def batch_spec(feat):
        return pl.BlockSpec((tile_b, feat), lambda i: (i, 0))

    def const_spec(arr):
        nd = arr.ndim
        return pl.BlockSpec(arr.shape, lambda i: (0,) * nd)

    const_inputs = [w0_obs, w0_acs, b0] + rest_flat + [dmean, dstd]
    in_specs = (
        [batch_spec(ob_dim), batch_spec(ac_dim)]
        + [const_spec(a) for a in const_inputs]
    )
    out_specs = (batch_spec(ob_dim), batch_spec(ob_dim))
    out_shape = (
        jax.ShapeDtypeStruct((B, ob_dim), jnp.float32),  # next_obs_pred
        jax.ShapeDtypeStruct((B, ob_dim), jnp.float32),  # delta_pred_normalized
    )

    next_obs_pred, delta_pred_normalized = pl.pallas_call(
        _make_ff_kernel(n_layers),
        grid=grid,
        out_shape=out_shape,
        in_specs=in_specs,
        out_specs=out_specs,
        compiler_params=pltpu.CompilerParams(
            dimension_semantics=("parallel",),   # megacore split on v7x
            vmem_limit_bytes=int(vmem_limit),
        ),
    )(obs, acs, *const_inputs)

    return next_obs_pred, delta_pred_normalized


# ----------------------------------------------------------------------------
# Reference + test harness
# ----------------------------------------------------------------------------
def _reference_forward(obs, acs, params, delta_mean, delta_std):
    """Pure-JAX reference matching the PyTorch forward."""
    x = jnp.concatenate([obs, acs], axis=1)
    h = x
    for i, (w, b) in enumerate(params):
        h = h @ w + b
        if i < len(params) - 1:
            h = jnp.tanh(h)
    delta_norm = h
    next_obs = obs + delta_norm * delta_std + delta_mean
    return next_obs, delta_norm


def _init_params(key, ob_dim, ac_dim, n_layers, size):
    """Deterministic synthetic init (uniform ~ PyTorch Linear default scale)."""
    params = []
    in_dim = ob_dim + ac_dim
    dims = [in_dim] + [size] * n_layers + [ob_dim]
    for i in range(len(dims) - 1):
        key, kw, kb = jax.random.split(key, 3)
        bound = 1.0 / jnp.sqrt(dims[i]).astype(jnp.float32)
        w = jax.random.uniform(
            kw, (dims[i], dims[i + 1]), jnp.float32, -bound, bound
        )
        b = jax.random.uniform(kb, (dims[i + 1],), jnp.float32, -bound, bound)
        params.append((w, b))
    return params


if __name__ == "__main__":
    # Small shapes consistent with the module: ob_dim, ac_dim, n_layers, size.
    B, OB_DIM, AC_DIM, N_LAYERS, SIZE = 8, 16, 8, 2, 32

    key = jax.random.PRNGKey(0)
    k_obs, k_acs, k_dm, k_ds, k_par = jax.random.split(key, 5)

    obs = jax.random.normal(k_obs, (B, OB_DIM), jnp.float32)
    acs = jax.random.normal(k_acs, (B, AC_DIM), jnp.float32)
    delta_mean = jax.random.normal(k_dm, (OB_DIM,), jnp.float32) * 0.1
    delta_std = jax.random.uniform(k_ds, (OB_DIM,), jnp.float32, 0.5, 1.5)

    params = _init_params(k_par, OB_DIM, AC_DIM, N_LAYERS, SIZE)

    # --- Small-shape check (single full-array block) --------------------------
    next_obs, delta_norm = ff_model_forward(
        obs, acs, params, delta_mean, delta_std, n_layers=N_LAYERS
    )
    jax.block_until_ready((next_obs, delta_norm))

    ref_next_obs, ref_delta_norm = _reference_forward(
        obs, acs, params, delta_mean, delta_std
    )
    assert next_obs.shape == (B, OB_DIM)
    assert delta_norm.shape == (B, OB_DIM)
    assert jnp.allclose(next_obs, ref_next_obs, atol=1e-5, rtol=1e-5)
    assert jnp.allclose(delta_norm, ref_delta_norm, atol=1e-5, rtol=1e-5)

    # --- Multi-tile check with ragged boundary block (no wrapper pad/slice) ---
    B2 = 300
    k_obs2, k_acs2 = jax.random.split(jax.random.PRNGKey(1), 2)
    obs2 = jax.random.normal(k_obs2, (B2, OB_DIM), jnp.float32)
    acs2 = jax.random.normal(k_acs2, (B2, AC_DIM), jnp.float32)

    next_obs2, delta_norm2 = ff_model_forward(
        obs2, acs2, params, delta_mean, delta_std,
        n_layers=N_LAYERS, max_tile_b=128,
    )
    jax.block_until_ready((next_obs2, delta_norm2))

    ref_next_obs2, ref_delta_norm2 = _reference_forward(
        obs2, acs2, params, delta_mean, delta_std
    )
    assert next_obs2.shape == (B2, OB_DIM)
    assert delta_norm2.shape == (B2, OB_DIM)
    assert jnp.allclose(next_obs2, ref_next_obs2, atol=1e-5, rtol=1e-5)
    assert jnp.allclose(delta_norm2, ref_delta_norm2, atol=1e-5, rtol=1e-5)

    # --- Larger-batch check (default tiling path, multi-step + ragged) --------
    B3 = 5000
    k_obs3, k_acs3 = jax.random.split(jax.random.PRNGKey(2), 2)
    obs3 = jax.random.normal(k_obs3, (B3, OB_DIM), jnp.float32)
    acs3 = jax.random.normal(k_acs3, (B3, AC_DIM), jnp.float32)

    next_obs3, delta_norm3 = ff_model_forward(
        obs3, acs3, params, delta_mean, delta_std, n_layers=N_LAYERS
    )
    jax.block_until_ready((next_obs3, delta_norm3))

    ref_next_obs3, ref_delta_norm3 = _reference_forward(
        obs3, acs3, params, delta_mean, delta_std
    )
    assert next_obs3.shape == (B3, OB_DIM)
    assert delta_norm3.shape == (B3, OB_DIM)
    assert jnp.allclose(next_obs3, ref_next_obs3, atol=1e-5, rtol=1e-5)
    assert jnp.allclose(delta_norm3, ref_delta_norm3, atol=1e-5, rtol=1e-5)

    print("KERNEL_OK")
</pallas_src>

<mosaic_0001>
module attributes {stable_mosaic.version = 11 : i64} {
  func.func @kernel(%arg0: i32, %arg1: memref<8x16xf32, #tpu.memory_space<vmem>>, %arg2: memref<8x8xf32, #tpu.memory_space<vmem>>, %arg3: memref<16x32xf32, #tpu.memory_space<vmem>>, %arg4: memref<8x32xf32, #tpu.memory_space<vmem>>, %arg5: memref<1x32xf32, #tpu.memory_space<vmem>>, %arg6: memref<32x32xf32, #tpu.memory_space<vmem>>, %arg7: memref<1x32xf32, #tpu.memory_space<vmem>>, %arg8: memref<32x16xf32, #tpu.memory_space<vmem>>, %arg9: memref<1x16xf32, #tpu.memory_space<vmem>>, %arg10: memref<1x16xf32, #tpu.memory_space<vmem>>, %arg11: memref<1x16xf32, #tpu.memory_space<vmem>>, %arg12: memref<8x16xf32, #tpu.memory_space<vmem>>, %arg13: memref<8x16xf32, #tpu.memory_space<vmem>>) attributes {dimension_semantics = [#tpu.dimension_semantics<parallel>], iteration_bounds = array<i64: 1>, scalar_prefetch = 0 : i64, scratch_operands = 0 : i64, tpu.core_type = #tpu.core_type<tc>, window_params = [{transform_indices = @transform_0, window_bounds = array<i64: 8, 16>}, {transform_indices = @transform_1, window_bounds = array<i64: 8, 8>}, {pipeline_mode = #tpu.pipeline_mode<synchronous>, transform_indices = @transform_2, window_bounds = array<i64: 16, 32>}, {pipeline_mode = #tpu.pipeline_mode<synchronous>, transform_indices = @transform_3, window_bounds = array<i64: 8, 32>}, {pipeline_mode = #tpu.pipeline_mode<synchronous>, transform_indices = @transform_4, window_bounds = array<i64: 1, 32>}, {pipeline_mode = #tpu.pipeline_mode<synchronous>, transform_indices = @transform_5, window_bounds = array<i64: 32, 32>}, {pipeline_mode = #tpu.pipeline_mode<synchronous>, transform_indices = @transform_6, window_bounds = array<i64: 1, 32>}, {pipeline_mode = #tpu.pipeline_mode<synchronous>, transform_indices = @transform_7, window_bounds = array<i64: 32, 16>}, {pipeline_mode = #tpu.pipeline_mode<synchronous>, transform_indices = @transform_8, window_bounds = array<i64: 1, 16>}, {pipeline_mode = #tpu.pipeline_mode<synchronous>, transform_indices = @transform_9, window_bounds = array<i64: 1, 16>}, {pipeline_mode = #tpu.pipeline_mode<synchronous>, transform_indices = @transform_10, window_bounds = array<i64: 1, 16>}, {transform_indices = @transform_11, window_bounds = array<i64: 8, 16>}, {transform_indices = @transform_12, window_bounds = array<i64: 8, 16>}]} {
    %c0 = arith.constant 0 : index
    %c0_0 = arith.constant 0 : index
    %0 = vector.load %arg1[%c0, %c0_0] : memref<8x16xf32, #tpu.memory_space<vmem>>, vector<8x16xf32>
    %c0_1 = arith.constant 0 : index
    %c0_2 = arith.constant 0 : index
    %1 = vector.load %arg3[%c0_1, %c0_2] : memref<16x32xf32, #tpu.memory_space<vmem>>, vector<16x32xf32>
    %cst = arith.constant dense<0.000000e+00> : vector<8x32xf32>
    %2 = tpu.matmul %0, %1, %cst {dimension_numbers = #tpu.dot_dimension_numbers<[1], [0], [0], [1], [0, 0, 1, 1], [], []>} : vector<8x16xf32>, vector<16x32xf32>, vector<8x32xf32> -> vector<8x32xf32>
    %c0_3 = arith.constant 0 : index
    %c0_4 = arith.constant 0 : index
    %3 = vector.load %arg2[%c0_3, %c0_4] : memref<8x8xf32, #tpu.memory_space<vmem>>, vector<8x8xf32>
    %c0_5 = arith.constant 0 : index
    %c0_6 = arith.constant 0 : index
    %4 = vector.load %arg4[%c0_5, %c0_6] : memref<8x32xf32, #tpu.memory_space<vmem>>, vector<8x32xf32>
    %cst_7 = arith.constant dense<0.000000e+00> : vector<8x32xf32>
    %5 = tpu.matmul %3, %4, %cst_7 {dimension_numbers = #tpu.dot_dimension_numbers<[1], [0], [0], [1], [0, 0, 1, 1], [], []>} : vector<8x8xf32>, vector<8x32xf32>, vector<8x32xf32> -> vector<8x32xf32>
    %6 = arith.addf %2, %5 : vector<8x32xf32>
    %c0_8 = arith.constant 0 : index
    %c0_9 = arith.constant 0 : index
    %7 = vector.load %arg5[%c0_8, %c0_9] : memref<1x32xf32, #tpu.memory_space<vmem>>, vector<1x32xf32>
    %8 = vector.broadcast %7 : vector<1x32xf32> to vector<8x32xf32>
    %9 = arith.addf %6, %8 : vector<8x32xf32>
    %10 = math.tanh %9 : vector<8x32xf32>
    %c0_10 = arith.constant 0 : index
    %c0_11 = arith.constant 0 : index
    %11 = vector.load %arg6[%c0_10, %c0_11] : memref<32x32xf32, #tpu.memory_space<vmem>>, vector<32x32xf32>
    %c0_12 = arith.constant 0 : index
    %c0_13 = arith.constant 0 : index
    %12 = vector.load %arg7[%c0_12, %c0_13] : memref<1x32xf32, #tpu.memory_space<vmem>>, vector<1x32xf32>
    %cst_14 = arith.constant dense<0.000000e+00> : vector<8x32xf32>
    %13 = tpu.matmul %10, %11, %cst_14 {dimension_numbers = #tpu.dot_dimension_numbers<[1], [0], [0], [1], [0, 0, 1, 1], [], []>} : vector<8x32xf32>, vector<32x32xf32>, vector<8x32xf32> -> vector<8x32xf32>
    %14 = vector.broadcast %12 : vector<1x32xf32> to vector<8x32xf32>
    %15 = arith.addf %13, %14 : vector<8x32xf32>
    %16 = math.tanh %15 : vector<8x32xf32>
    %c0_15 = arith.constant 0 : index
    %c0_16 = arith.constant 0 : index
    %17 = vector.load %arg8[%c0_15, %c0_16] : memref<32x16xf32, #tpu.memory_space<vmem>>, vector<32x16xf32>
    %c0_17 = arith.constant 0 : index
    %c0_18 = arith.constant 0 : index
    %18 = vector.load %arg9[%c0_17, %c0_18] : memref<1x16xf32, #tpu.memory_space<vmem>>, vector<1x16xf32>
    %cst_19 = arith.constant dense<0.000000e+00> : vector<8x16xf32>
    %19 = tpu.matmul %16, %17, %cst_19 {dimension_numbers = #tpu.dot_dimension_numbers<[1], [0], [0], [1], [0, 0, 1, 1], [], []>} : vector<8x32xf32>, vector<32x16xf32>, vector<8x16xf32> -> vector<8x16xf32>
    %20 = vector.broadcast %18 : vector<1x16xf32> to vector<8x16xf32>
    %21 = arith.addf %19, %20 : vector<8x16xf32>
    %c0_20 = arith.constant 0 : index
    %c0_21 = arith.constant 0 : index
    %22 = vector.load %arg13[%c0_20, %c0_21] : memref<8x16xf32, #tpu.memory_space<vmem>>, vector<8x16xf32>
    tpu.vector_store %arg13[%c0_20, %c0_21], %21 {strides = array<i32>} : memref<8x16xf32, #tpu.memory_space<vmem>>, vector<8x16xf32>,
    %c0_22 = arith.constant 0 : index
    %c0_23 = arith.constant 0 : index
    %23 = vector.load %arg11[%c0_22, %c0_23] : memref<1x16xf32, #tpu.memory_space<vmem>>, vector<1x16xf32>
    %24 = vector.broadcast %23 : vector<1x16xf32> to vector<8x16xf32>
    %25 = arith.mulf %21, %24 : vector<8x16xf32>
    %26 = arith.addf %0, %25 : vector<8x16xf32>
    %c0_24 = arith.constant 0 : index
    %c0_25 = arith.constant 0 : index
    %27 = vector.load %arg10[%c0_24, %c0_25] : memref<1x16xf32, #tpu.memory_space<vmem>>, vector<1x16xf32>
    %28 = vector.broadcast %27 : vector<1x16xf32> to vector<8x16xf32>
    %29 = arith.addf %26, %28 : vector<8x16xf32>
    %c0_26 = arith.constant 0 : index
    %c0_27 = arith.constant 0 : index
    %30 = vector.load %arg12[%c0_26, %c0_27] : memref<8x16xf32, #tpu.memory_space<vmem>>, vector<8x16xf32>
    tpu.vector_store %arg12[%c0_26, %c0_27], %29 {strides = array<i32>} : memref<8x16xf32, #tpu.memory_space<vmem>>, vector<8x16xf32>,
    return
  }
  func.func @transform_0(%arg0: i32) -> (i32, i32) {
    %c0_i32 = arith.constant 0 : i32
    %c0_i32_0 = arith.constant 0 : i32
    return %arg0, %c0_i32 : i32, i32
  }
  func.func @transform_1(%arg0: i32) -> (i32, i32) {
    %c0_i32 = arith.constant 0 : i32
    %c0_i32_0 = arith.constant 0 : i32
    return %arg0, %c0_i32 : i32, i32
  }
  func.func @transform_2(%arg0: i32) -> (i32, i32) {
    %c0_i32 = arith.constant 0 : i32
    %c0_i32_0 = arith.constant 0 : i32
    %c0_i32_1 = arith.constant 0 : i32
    return %c0_i32, %c0_i32_0 : i32, i32
  }
  func.func @transform_3(%arg0: i32) -> (i32, i32) {
    %c0_i32 = arith.constant 0 : i32
    %c0_i32_0 = arith.constant 0 : i32
    %c0_i32_1 = arith.constant 0 : i32
    return %c0_i32, %c0_i32_0 : i32, i32
  }
  func.func @transform_4(%arg0: i32) -> (i32, i32) {
    %c0_i32 = arith.constant 0 : i32
    %c0_i32_0 = arith.constant 0 : i32
    %c0_i32_1 = arith.constant 0 : i32
    return %c0_i32, %c0_i32_0 : i32, i32
  }
  func.func @transform_5(%arg0: i32) -> (i32, i32) {
    %c0_i32 = arith.constant 0 : i32
    %c0_i32_0 = arith.constant 0 : i32
    %c0_i32_1 = arith.constant 0 : i32
    return %c0_i32, %c0_i32_0 : i32, i32
  }
  func.func @transform_6(%arg0: i32) -> (i32, i32) {
    %c0_i32 = arith.constant 0 : i32
    %c0_i32_0 = arith.constant 0 : i32
    %c0_i32_1 = arith.constant 0 : i32
    return %c0_i32, %c0_i32_0 : i32, i32
  }
  func.func @transform_7(%arg0: i32) -> (i32, i32) {
    %c0_i32 = arith.constant 0 : i32
    %c0_i32_0 = arith.constant 0 : i32
    %c0_i32_1 = arith.constant 0 : i32
    return %c0_i32, %c0_i32_0 : i32, i32
  }
  func.func @transform_8(%arg0: i32) -> (i32, i32) {
    %c0_i32 = arith.constant 0 : i32
    %c0_i32_0 = arith.constant 0 : i32
    %c0_i32_1 = arith.constant 0 : i32
    return %c0_i32, %c0_i32_0 : i32, i32
  }
  func.func @transform_9(%arg0: i32) -> (i32, i32) {
    %c0_i32 = arith.constant 0 : i32
    %c0_i32_0 = arith.constant 0 : i32
    %c0_i32_1 = arith.constant 0 : i32
    return %c0_i32, %c0_i32_0 : i32, i32
  }
  func.func @transform_10(%arg0: i32) -> (i32, i32) {
    %c0_i32 = arith.constant 0 : i32
    %c0_i32_0 = arith.constant 0 : i32
    %c0_i32_1 = arith.constant 0 : i32
    return %c0_i32, %c0_i32_0 : i32, i32
  }
  func.func @transform_11(%arg0: i32) -> (i32, i32) {
    %c0_i32 = arith.constant 0 : i32
    %c0_i32_0 = arith.constant 0 : i32
    return %arg0, %c0_i32 : i32, i32
  }
  func.func @transform_12(%arg0: i32) -> (i32, i32) {
    %c0_i32 = arith.constant 0 : i32
    %c0_i32_0 = arith.constant 0 : i32
    return %arg0, %c0_i32 : i32, i32
  }
}

</mosaic_0001>

<bundles_post_ra>
// kernel: ff_model_forward.1
= control target key start
LH: loop header
LB: loop body
LE: loop exit
PB: predicated region body
PF: predicated region fallthrough
CT: control target
= control target key end

     0   :  { %18 = vsyncpa [#allocation3], 0  ;;  %vm47_vm0 = vcmask 64512   ;;  %vm71_vm1 = vcmask 130048   ;;  %s409_s0 = inlined_call_operand.vmem [shape: f32[8,16], index: 0, kind: input, shape index: {}]   ;;  %s410_s1 = inlined_call_operand.vmem [shape: f32[8,8], index: 1, kind: input, shape index: {}]   ;;  %s411_s2 = inlined_call_operand.vmem [shape: f32[16,32], index: 2, kind: input, shape index: {}]   ;;  %s412_s3 = inlined_call_operand.vmem [shape: f32[8,32], index: 3, kind: input, shape index: {}]   ;;  %s413_s4 = inlined_call_operand.vmem [shape: f32[1,32], index: 4, kind: input, shape index: {}]   ;;  %s414_s5 = inlined_call_operand.vmem [shape: f32[32,32], index: 5, kind: input, shape index: {}]   ;;  %s415_s6 = inlined_call_operand.vmem [shape: f32[1,32], index: 6, kind: input, shape index: {}]   ;;  %s416_s7 = inlined_call_operand.vmem [shape: f32[32,16], index: 7, kind: input, shape index: {}]   ;;  %s417_s8 = inlined_call_operand.vmem [shape: f32[1,16], index: 8, kind: input, shape index: {}]   ;;  %s418_s9 = inlined_call_operand.vmem [shape: f32[1,16], index: 9, kind: input, shape index: {}]   ;;  %s419_s10 = inlined_call_operand.vmem [shape: f32[1,16], index: 10, kind: input, shape index: {}]   ;;  %s420_s11 = inlined_call_operand.hbm [shape: f32[8,16], index: 11, kind: output, shape index: {0}]   ;;  %s421_s12 = inlined_call_operand.hbm [shape: f32[8,16], index: 12, kind: output, shape index: {1}]  }
   0x1   :  { %v44_v0 = vld [vmem:[%s411_s2 + $0x8] sm:$0xff]  ;;  %v46_v1 = vld [vmem:[%s412_s3] sm:$0xff] }
   0x2   :  { %v43_v2 = vld [vmem:[%s411_s2] sm:$0xff]  ;;  %89 = vmatpush.msra.mxu1 %v44_v0  ;;  %66 = vmatpush.msra.mxu0 %v46_v1 }
   0x3   :  { %v45_v3 = vld [vmem:[%s410_s1] sm:$0xff] }
   0x4   :  { %v42_v4 = vld [vmem:[%s409_s0] sm:$0xff]  ;;  %210 = vmatmul.msk.f32.vlgmr.msra.gmra.mxu0 %vm47_vm0, %v45_v3  ;;  %90 = vmatpush.msra.mxu1 %v43_v2 }
   0x5   :  { %19 = vsyncpa [#allocation5], 0  ;;  %211 = vmatmul.msk.f32.vlgmr.msra.gmra.mxu1 %vm71_vm1, %v42_v4  ;;  %v104_v5 = vld [vmem:[%s414_s5 + $0x18] sm:$0xff]  ;;  %v103_v6 = vld [vmem:[%s414_s5 + $0x10] sm:$0xff]  ;;  %vm109_vm2 = vcmask 261120   ;;  %s277_s29 = smov [#allocation4]  }
   0x6   :  { %125 = vmatpush.msra.mxu2 %v104_v5  ;;  %v102_v7 = vld [vmem:[%s414_s5 + $0x8] sm:$0xff]  ;;  %v101_v8 = vld [vmem:[%s414_s5] sm:$0xff]  ;;  %v137_v15 = vld [vmem:[%s416_s7 + $0x18] sm:$0xff]  ;;  %s194_s30 = sshll.u32 %s277_s29, 4  ;;  %s196_s13 = sshll.u32 %s421_s12, 4  ;;  %s195_s30 = int_to_ptr.vmem [resolvable:$true] %s194_s30  ;;  %s197_s13 = int_to_ptr.hbm [resolvable:$true] %s196_s13 }
   0x7   :  { %v216_v10 = vld [vmem:[%s413_s4] ss:$0 sm:$0xff]  ;;  %157 = vmatpush.msra.mxu3 %v137_v15  ;;  %v136_v16 = vld [vmem:[%s416_s7 + $0x10] sm:$0xff]  ;;  %v135_v17 = vld [vmem:[%s416_s7 + $0x8] sm:$0xff]  ;;  %s185_s12 = sshll.u32 %s420_s11, 4  ;;  %s186_s12 = int_to_ptr.hbm [resolvable:$true] %s185_s12 }
   0x8   :  { %126 = vmatpush.msra.mxu2 %v103_v6  ;;  %v134_v18 = vld [vmem:[%s416_s7] sm:$0xff] }
   0x9   :  { %158 = vmatpush.msra.mxu3 %v136_v16  ;;  %v217_v19 = vld [vmem:[%s415_s6] ss:$0 sm:$0xff] }
   0xa   :  { %127 = vmatpush.msra.mxu2 %v102_v7  ;;  %v218_v23 = vld [vmem:[%s417_s8] ss:$0 sm:$0xff]  ;;  %s278_s8 = smov [#allocation2]  }
   0xb   :  { %159 = vmatpush.msra.mxu3 %v135_v17  ;;  %v219_v24 = vld [vmem:[%s419_s10] ss:$0 sm:$0xff]  ;;  %s183_s15 = sshll.u32 %s278_s8, 4  ;;  %s184_s15 = int_to_ptr.vmem [resolvable:$true] %s183_s15 }
   0xc   :  { %128 = vmatpush.msra.mxu2 %v101_v8  ;;  %v220_v28 = vld [vmem:[%s418_s9] ss:$0 sm:$0xff] }
   0xd   :  { %160 = vmatpush.msra.mxu3 %v134_v18 }
  0x81   :  { %v68_v9 = vpop.f32.mrf.mxu0 }
  0x82   :  { %v92_v11 = vpop.f32.mrf.mxu1 }
  0x83   :  { %v93_v12 = vadd.f32 %v92_v11, %v68_v9 }
  0x85   :  { %v99_v13 = vadd.f32 %v216_v10, %v93_v12 }
  0x87   :  { %221 = vtanh.f32 %v99_v13 }
  0x8d   :  { %v222_v14 = vpop.eup %221 }
  0x8e   :  { %212 = vmatmul.msk.f32.vlgmr.msra.gmra.mxu2 %vm109_vm2, %v222_v14 }
 0x111   :  { %v130_v20 = vpop.f32.mrf.mxu2 }
 0x112   :  { %v131_v21 = vadd.f32 %v217_v19, %v130_v20 }
 0x114   :  { %223 = vtanh.f32 %v131_v21 }
 0x11a   :  { %v224_v22 = vpop.eup %223 }
 0x11b   :  { %213 = vmatmul.msk.f32.vlgmr.msra.gmra.mxu3 %vm109_vm2, %v224_v22 }
 0x19e   :  { %v162_v25 = vpop.f32.mrf.mxu3 }
 0x19f   :  { %v163_v26 = vadd.f32 %v218_v23, %v162_v25 }
 0x1a1   :  { %165 = vst.msk [vmem:[#allocation4] sm:$0xff] %vm71_vm1, %v163_v26  ;;  %v170_v27 = vmul.f32 %v219_v24, %v163_v26 }
 0x1a2   :  { %199 = dma.vmem_to_hbm [thread:$0]  %s195_s30, 128, %s197_s13, [#allocation5]  }
 0x1a3   :  { %v171_v29 = vadd.f32 %v170_v27, %v42_v4 }
 0x1a5   :  { %v176_v30 = vadd.f32 %v220_v28, %v171_v29 }
 0x1a7   :  { %177 = vst.msk [vmem:[#allocation2] sm:$0xff] %vm71_vm1, %v176_v30 }
 0x1a8   :  { %188 = dma.vmem_to_hbm [thread:$0]  %s184_s15, 128, %s186_s12, [#allocation3]  }
 0x1a9   :  { %273 = dma.done.wait [#allocation3], 128  }
 0x1aa   :  { %274 = vsyncadd [#allocation3], 4294967168 }
 0x1ab   :  { %275 = dma.done.wait [#allocation5], 128  }
 0x1ac   :  { %276 = vsyncadd [#allocation5], 4294967168 }
 0x1ad   :  { %208 = vsyncpa [#allocation3], 1 }
 0x1ae   :  { %209 = vsyncpa [#allocation5], 1 }

</bundles_post_ra>
